<compile_context>
chip_gen: v6e
topology: v6e:2x2x1
jax: 0.10.0
libtpu: 0.0.40
codegen_flags: <defaults>
</compile_context>

<pallas_src>
import jax
import jax.numpy as jnp
from jax.experimental import pallas as pl
from jax.experimental.pallas import tpu as pltpu


NEG_SLOPE = 0.2          # GATConv default negative_slope
_MASK_FILL = -1e30       # "minus infinity" for masked softmax entries


def _round_up(v, m):
    return ((v + m - 1) // m) * m


def _rgat_kernel(x_ref, adj_ref, w_ref, asrc_ref, adst_ref, out_ref):
    """One (target-node-tile, relation) grid step.

    x_ref    : [N_p, Fin_p]   bf16, all source nodes (resident, constant block)
    adj_ref  : [tn, N_p]      bf16 edge counts, rows = targets of this tile
    w_ref    : [Fin_p, Fout_p] bf16, relation weight
    asrc_ref : [1, N_p]       f32 source logit half  <x_s, W_r a_src_r>
    adst_ref : [tn, 1]        f32 target logit half  <x_t, W_r a_dst_r>
    out_ref  : [tn, Fout_p]   f32 accumulator (resident across relations)
    """
    r = pl.program_id(1)

    @pl.when(r == 0)
    def _():
        out_ref[...] = jnp.zeros_like(out_ref)

    # h_s = x_s @ W_r for every source node (bf16 MXU inputs, f32 accumulate).
    h = jnp.dot(x_ref[...], w_ref[...],
                preferred_element_type=jnp.float32)          # [N_p, Fout_p]

    # Attention logits (f32): e[t, s] = LeakyReLU(a_dst[t] + a_src[s]).
    e = adst_ref[...] + asrc_ref[...]                        # [tn, N_p]
    e = jnp.where(e >= 0.0, e, NEG_SLOPE * e)

    adj = adj_ref[...].astype(jnp.float32)                   # edge counts
    e = jnp.where(adj > 0.0, e, _MASK_FILL)
    e_max = jnp.max(e, axis=1, keepdims=True)   # finite: every row has a self loop
    p = adj * jnp.exp(e - e_max)                # unnormalized attention weights
    denom = jnp.sum(p, axis=1, keepdims=True)

    # Weighted neighbour aggregation on the MXU (bf16 in, f32 accumulate).
    agg = jnp.dot(p.astype(jnp.bfloat16), h.astype(jnp.bfloat16),
                  preferred_element_type=jnp.float32)        # [tn, Fout_p]

    out_ref[...] += agg * pl.reciprocal(denom, approx=False)


def rgat_conv_pallas(x, adj, params, node_tile=256):
    """x: [N, Fin] f32; adj: [R, N, N] f32 counts with diag forced to 1
    (adj[r, t, s] = #edges s->t of relation r, after remove+add self loops)."""
    n, fin = x.shape
    num_rel = adj.shape[0]
    fout = params["w_sl"].shape[1]

    fin_p = _round_up(fin, 128)                  # lane-dense feature dims
    fout_p = _round_up(fout, 128)
    tn = _round_up(min(node_tile, _round_up(n, 8)), 8)
    n_p = _round_up(n, tn)
    num_tiles = n_p // tn

    # --- layout / parameter plumbing (zero padding keeps the math exact) ---
    x_p = (jnp.zeros((n_p, fin_p), jnp.float32).at[:n, :fin].set(x)
           .astype(jnp.bfloat16))                            # MXU operand only

    adj_p = jnp.zeros((num_rel, n_p, n_p), jnp.float32).at[:, :n, :n].set(adj)
    pad_idx = jnp.arange(n, n_p)
    adj_p = adj_p.at[:, pad_idx, pad_idx].set(1.0)           # padded rows: self loop
    adj_p = adj_p.astype(jnp.bfloat16)                       # counts stay exact

    w_p = (jnp.zeros((num_rel, fin_p, fout_p), jnp.float32)
           .at[:, :fin, :fout].set(params["w"]).astype(jnp.bfloat16))

    # Parameter-only fold: <x@W_r, a> = <x, W_r@a>; then the per-node logit
    # halves (O(R*N*Fin), negligible vs the O(R*N^2) kernel work) in f32.
    u_src = jnp.einsum("rio,ro->ri", params["w"], params["att_src"])   # [R, Fin]
    u_dst = jnp.einsum("rio,ro->ri", params["w"], params["att_dst"])
    a_src = jnp.einsum("nf,rf->rn", x, u_src)                           # [R, N]
    a_dst = jnp.einsum("nf,rf->rn", x, u_dst)
    a_src_p = jnp.zeros((num_rel, 1, n_p), jnp.float32).at[:, 0, :n].set(a_src)
    a_dst_p = jnp.zeros((num_rel, n_p, 1), jnp.float32).at[:, :n, 0].set(a_dst)

    kernel = pl.pallas_call(
        _rgat_kernel,
        out_shape=jax.ShapeDtypeStruct((n_p, fout_p), jnp.float32),
        grid=(num_tiles, num_rel),
        in_specs=[
            pl.BlockSpec((n_p, fin_p), lambda i, r: (0, 0)),             # x (all sources)
            pl.BlockSpec((None, tn, n_p), lambda i, r: (r, i, 0)),       # adj[r] row tile
            pl.BlockSpec((None, fin_p, fout_p), lambda i, r: (r, 0, 0)), # W[r]
            pl.BlockSpec((None, 1, n_p), lambda i, r: (r, 0, 0)),        # a_src[r]
            pl.BlockSpec((None, tn, 1), lambda i, r: (r, i, 0)),         # a_dst[r] tile
        ],
        out_specs=pl.BlockSpec((tn, fout_p), lambda i, r: (i, 0)),
        compiler_params=pltpu.CompilerParams(
            dimension_semantics=("parallel", "arbitrary"),
            vmem_limit_bytes=48 * 1024 * 1024,
        ),
    )
    out_p = kernel(x_p, adj_p, w_p, a_src_p, a_dst_p)

    # Self-loop Linear hoisted out of the relation loop; the per-relation GAT
    # biases are parameter-only and folded into the same add.
    bias_total = params["b_sl"] + jnp.sum(params["bias"], axis=0)
    x_sl = x @ params["w_sl"] + bias_total
    return x_sl + out_p[:n, :fout]


def build_relation_adjacency(edge_index, edge_type, num_nodes, num_relations):
    """Dense per-relation edge-count matrices with GATConv's remove+add self loops."""
    src, dst = edge_index[0], edge_index[1]
    adj = jnp.zeros((num_relations, num_nodes, num_nodes), jnp.float32)
    adj = adj.at[edge_type, dst, src].add(1.0)
    eye = jnp.eye(num_nodes, dtype=jnp.float32)
    return adj * (1.0 - eye)[None] + eye[None]


def init_params(key, fin, fout, num_rel):
    ks = jax.random.split(key, 6)
    s_in = 1.0 / float(fin) ** 0.5
    s_out = 1.0 / float(fout) ** 0.5
    return {
        # Linear weights stored pre-transposed as [in, out] (y = x @ W + b).
        "w_sl": jax.random.uniform(ks[0], (fin, fout), jnp.float32, -s_in, s_in),
        "b_sl": jax.random.uniform(ks[1], (fout,), jnp.float32, -s_in, s_in),
        "w": jax.random.uniform(ks[2], (num_rel, fin, fout), jnp.float32, -s_in, s_in),
        "att_src": jax.random.uniform(ks[3], (num_rel, fout), jnp.float32, -s_out, s_out),
        "att_dst": jax.random.uniform(ks[4], (num_rel, fout), jnp.float32, -s_out, s_out),
        "bias": jax.random.uniform(ks[5], (num_rel, fout), jnp.float32, -s_out, s_out),
    }


def rgat_conv_reference(x, adj, params):
    """Pure-f32 JAX reference. Dense masked softmax over the edge-count matrix is
    mathematically identical to PyG GATConv's per-edge softmax (heads=1)."""
    out = x @ params["w_sl"] + params["b_sl"]
    for r in range(adj.shape[0]):
        h = x @ params["w"][r]                                   # [N, Fout]
        a_s = h @ params["att_src"][r]                           # [N]
        a_d = h @ params["att_dst"][r]                           # [N]
        e = a_d[:, None] + a_s[None, :]                          # e[t, s]
        e = jnp.where(e >= 0.0, e, NEG_SLOPE * e)
        m = adj[r] > 0.0
        e = jnp.where(m, e, -jnp.inf)
        e_max = jnp.max(e, axis=1, keepdims=True)
        p = adj[r] * jnp.exp(e - e_max)
        p = p / jnp.sum(p, axis=1, keepdims=True)
        out = out + p @ h + params["bias"][r]
    return out


if __name__ == "__main__":
    key = jax.random.PRNGKey(0)
    k_x, k_src, k_dst, k_type, k_params = jax.random.split(key, 5)

    num_nodes = 50        # deliberately not a multiple of the node tile
    in_features = 16
    out_features = 32
    num_relations = 3
    num_edges = 128

    x = jax.random.normal(k_x, (num_nodes, in_features), jnp.float32)
    src = jax.random.randint(k_src, (num_edges,), 0, num_nodes)
    dst = jax.random.randint(k_dst, (num_edges,), 0, num_nodes)
    edge_index = jnp.stack([src, dst], axis=0)                  # [2, E]
    edge_type = jax.random.randint(k_type, (num_edges,), 0, num_relations)

    params = init_params(k_params, in_features, out_features, num_relations)
    adj = build_relation_adjacency(edge_index, edge_type, num_nodes, num_relations)

    # node_tile=32 -> 2 node tiles: exercises the parallel node axis and padding.
    out = jax.block_until_ready(rgat_conv_pallas(x, adj, params, node_tile=32))
    ref = rgat_conv_reference(x, adj, params)

    assert out.shape == (num_nodes, out_features)
    assert bool(jnp.all(jnp.isfinite(out)))
    # Kernel uses bf16 MXU inputs (f32 accumulate) vs. a pure-f32 reference;
    # attention logits are kept in f32 so the error is only in the feature matmuls.
    max_err = float(jnp.max(jnp.abs(out - ref)))
    assert jnp.allclose(out, ref, atol=3e-2, rtol=3e-2), f"max abs err {max_err}"
    print("KERNEL_OK")
</pallas_src>

<mosaic_0001>
module attributes {stable_mosaic.version = 11 : i64} {
  func.func @_rgat_kernel(%arg0: i32, %arg1: i32, %arg2: memref<64x128xbf16, #tpu.memory_space<vmem>>, %arg3: memref<1x32x64xbf16, #tpu.memory_space<vmem>>, %arg4: memref<1x128x128xbf16, #tpu.memory_space<vmem>>, %arg5: memref<1x1x64xf32, #tpu.memory_space<vmem>>, %arg6: memref<1x32x1xf32, #tpu.memory_space<vmem>>, %arg7: memref<32x128xf32, #tpu.memory_space<vmem>>) attributes {dimension_semantics = [#tpu.dimension_semantics<parallel>, #tpu.dimension_semantics<arbitrary>], iteration_bounds = array<i64: 2, 3>, scalar_prefetch = 0 : i64, scratch_operands = 0 : i64, tpu.core_type = #tpu.core_type<tc>, window_params = [{pipeline_mode = #tpu.pipeline_mode<synchronous>, transform_indices = @transform_0, window_bounds = array<i64: 64, 128>}, {transform_indices = @transform_1, window_bounds = array<i64: 1, 32, 64>}, {transform_indices = @transform_2, window_bounds = array<i64: 1, 128, 128>}, {transform_indices = @transform_3, window_bounds = array<i64: 1, 1, 64>}, {transform_indices = @transform_4, window_bounds = array<i64: 1, 32, 1>}, {transform_indices = @transform_5, window_bounds = array<i64: 32, 128>}]} {
    %c0_i32 = arith.constant 0 : i32
    %0 = arith.cmpi eq, %arg1, %c0_i32 : i32
    %1 = arith.extui %0 : i1 to i32
    %c0_i32_0 = arith.constant 0 : i32
    %2 = arith.cmpi ne, %1, %c0_i32_0 : i32
    scf.if %2 {
      %cst_25 = arith.constant 0.000000e+00 : f32
      %43 = vector.broadcast %cst_25 : f32 to vector<32x128xf32>
      %c0_26 = arith.constant 0 : index
      %c0_27 = arith.constant 0 : index
      %44 = vector.load %arg7[%c0_26, %c0_27] : memref<32x128xf32, #tpu.memory_space<vmem>>, vector<32x128xf32>
      tpu.vector_store %arg7[%c0_26, %c0_27], %43 {strides = array<i32>} : memref<32x128xf32, #tpu.memory_space<vmem>>, vector<32x128xf32>,
    } else {
    }
    %c0 = arith.constant 0 : index
    %c0_1 = arith.constant 0 : index
    %3 = vector.load %arg2[%c0, %c0_1] : memref<64x128xbf16, #tpu.memory_space<vmem>>, vector<64x128xbf16>
    %c0_2 = arith.constant 0 : index
    %c0_3 = arith.constant 0 : index
    %c0_4 = arith.constant 0 : index
    %4 = vector.load %arg4[%c0_2, %c0_3, %c0_4] : memref<1x128x128xbf16, #tpu.memory_space<vmem>>, vector<1x128x128xbf16>
    %5 = vector.shape_cast %4 : vector<1x128x128xbf16> to vector<128x128xbf16>
    %cst = arith.constant dense<0.000000e+00> : vector<64x128xf32>
    %6 = tpu.matmul %3, %5, %cst {dimension_numbers = #tpu.dot_dimension_numbers<[1], [0], [0], [1], [0, 0, 1, 1], [], []>} : vector<64x128xbf16>, vector<128x128xbf16>, vector<64x128xf32> -> vector<64x128xf32>
    %c0_5 = arith.constant 0 : index
    %c0_6 = arith.constant 0 : index
    %c0_7 = arith.constant 0 : index
    %7 = vector.load %arg6[%c0_5, %c0_6, %c0_7] : memref<1x32x1xf32, #tpu.memory_space<vmem>>, vector<1x32x1xf32>
    %8 = vector.shape_cast %7 : vector<1x32x1xf32> to vector<32x1xf32>
    %c0_8 = arith.constant 0 : index
    %c0_9 = arith.constant 0 : index
    %c0_10 = arith.constant 0 : index
    %9 = vector.load %arg5[%c0_8, %c0_9, %c0_10] : memref<1x1x64xf32, #tpu.memory_space<vmem>>, vector<1x1x64xf32>
    %10 = vector.shape_cast %9 : vector<1x1x64xf32> to vector<1x64xf32>
    %11 = vector.broadcast %8 : vector<32x1xf32> to vector<32x64xf32>
    %12 = vector.broadcast %10 : vector<1x64xf32> to vector<32x64xf32>
    %13 = arith.addf %11, %12 : vector<32x64xf32>
    %cst_11 = arith.constant 0.000000e+00 : f32
    %14 = vector.broadcast %cst_11 : f32 to vector<32x64xf32>
    %15 = arith.cmpf oge, %13, %14 : vector<32x64xf32>
    %cst_12 = arith.constant 2.000000e-01 : f32
    %16 = vector.broadcast %cst_12 : f32 to vector<32x64xf32>
    %17 = arith.mulf %16, %13 : vector<32x64xf32>
    %18 = arith.select %15, %13, %17 : vector<32x64xi1>, vector<32x64xf32>
    %c0_13 = arith.constant 0 : index
    %c0_14 = arith.constant 0 : index
    %c0_15 = arith.constant 0 : index
    %19 = vector.load %arg3[%c0_13, %c0_14, %c0_15] : memref<1x32x64xbf16, #tpu.memory_space<vmem>>, vector<1x32x64xbf16>
    %20 = vector.shape_cast %19 : vector<1x32x64xbf16> to vector<32x64xbf16>
    %21 = arith.extf %20 : vector<32x64xbf16> to vector<32x64xf32>
    %cst_16 = arith.constant 0.000000e+00 : f32
    %22 = vector.broadcast %cst_16 : f32 to vector<32x64xf32>
    %23 = arith.cmpf ogt, %21, %22 : vector<32x64xf32>
    %cst_17 = arith.constant -1.000000e+30 : f32
    %24 = vector.broadcast %cst_17 : f32 to vector<32x64xf32>
    %25 = arith.select %23, %18, %24 : vector<32x64xi1>, vector<32x64xf32>
    %cst_18 = arith.constant dense<0xFF800000> : vector<32xf32>
    %26 = vector.multi_reduction <maximumf>, %25, %cst_18 [1] : vector<32x64xf32> to vector<32xf32>
    %27 = vector.shape_cast %26 : vector<32xf32> to vector<32x1xf32>
    %28 = vector.broadcast %27 : vector<32x1xf32> to vector<32x64xf32>
    %29 = arith.subf %25, %28 : vector<32x64xf32>
    %30 = math.exp %29 : vector<32x64xf32>
    %31 = arith.mulf %21, %30 : vector<32x64xf32>
    %cst_19 = arith.constant dense<0.000000e+00> : vector<32xf32>
    %32 = vector.multi_reduction <add>, %31, %cst_19 [1] : vector<32x64xf32> to vector<32xf32>
    %33 = vector.shape_cast %32 : vector<32xf32> to vector<32x1xf32>
    %34 = arith.truncf %31 : vector<32x64xf32> to vector<32x64xbf16>
    %35 = arith.truncf %6 : vector<64x128xf32> to vector<64x128xbf16>
    %cst_20 = arith.constant dense<0.000000e+00> : vector<32x128xf32>
    %36 = tpu.matmul %34, %35, %cst_20 {dimension_numbers = #tpu.dot_dimension_numbers<[1], [0], [0], [1], [0, 0, 1, 1], [], []>} : vector<32x64xbf16>, vector<64x128xbf16>, vector<32x128xf32> -> vector<32x128xf32>
    %c0_21 = arith.constant 0 : index
    %c0_22 = arith.constant 0 : index
    %37 = vector.load %arg7[%c0_21, %c0_22] : memref<32x128xf32, #tpu.memory_space<vmem>>, vector<32x128xf32>
    %38 = tpu.reciprocal %33 : vector<32x1xf32> -> vector<32x1xf32>
    %39 = vector.broadcast %38 : vector<32x1xf32> to vector<32x128xf32>
    %40 = arith.mulf %36, %39 : vector<32x128xf32>
    %41 = arith.addf %37, %40 : vector<32x128xf32>
    %c0_23 = arith.constant 0 : index
    %c0_24 = arith.constant 0 : index
    %42 = vector.load %arg7[%c0_23, %c0_24] : memref<32x128xf32, #tpu.memory_space<vmem>>, vector<32x128xf32>
    tpu.vector_store %arg7[%c0_23, %c0_24], %41 {strides = array<i32>} : memref<32x128xf32, #tpu.memory_space<vmem>>, vector<32x128xf32>,
    return
  }
  func.func @transform_0(%arg0: i32, %arg1: i32) -> (i32, i32) {
    %c0_i32 = arith.constant 0 : i32
    %c0_i32_0 = arith.constant 0 : i32
    %c0_i32_1 = arith.constant 0 : i32
    return %c0_i32, %c0_i32_0 : i32, i32
  }
  func.func @transform_1(%arg0: i32, %arg1: i32) -> (i32, i32, i32) {
    %c0_i32 = arith.constant 0 : i32
    %c0_i32_0 = arith.constant 0 : i32
    return %arg1, %arg0, %c0_i32 : i32, i32, i32
  }
  func.func @transform_2(%arg0: i32, %arg1: i32) -> (i32, i32, i32) {
    %c0_i32 = arith.constant 0 : i32
    %c0_i32_0 = arith.constant 0 : i32
    %c0_i32_1 = arith.constant 0 : i32
    return %arg1, %c0_i32, %c0_i32_0 : i32, i32, i32
  }
  func.func @transform_3(%arg0: i32, %arg1: i32) -> (i32, i32, i32) {
    %c0_i32 = arith.constant 0 : i32
    %c0_i32_0 = arith.constant 0 : i32
    %c0_i32_1 = arith.constant 0 : i32
    return %arg1, %c0_i32, %c0_i32_0 : i32, i32, i32
  }
  func.func @transform_4(%arg0: i32, %arg1: i32) -> (i32, i32, i32) {
    %c0_i32 = arith.constant 0 : i32
    %c0_i32_0 = arith.constant 0 : i32
    return %arg1, %arg0, %c0_i32 : i32, i32, i32
  }
  func.func @transform_5(%arg0: i32, %arg1: i32) -> (i32, i32) {
    %c0_i32 = arith.constant 0 : i32
    %c0_i32_0 = arith.constant 0 : i32
    return %arg0, %c0_i32 : i32, i32
  }
}

</mosaic_0001>

<bundles_post_ra>
// kernel: tpu_custom_call.1
= control target key start
LH: loop header
LB: loop body
LE: loop exit
PB: predicated region body
PF: predicated region fallthrough
CT: control target
= control target key end

     0   :  { %s1642_s0 = inlined_call_operand.hbm [shape: bf16[64,128], index: 0, kind: input, shape index: {}]   ;;  %s1643_s1 = inlined_call_operand.hbm [shape: bf16[3,64,64], index: 1, kind: input, shape index: {}]   ;;  %s1644_s2 = inlined_call_operand.vmem [shape: bf16[3,128,128], index: 2, kind: input, shape index: {}]   ;;  %s1645_s3 = inlined_call_operand.vmem [shape: f32[3,1,64], index: 3, kind: input, shape index: {}]   ;;  %s1646_s4 = inlined_call_operand.vmem [shape: f32[3,64,1], index: 4, kind: input, shape index: {}]   ;;  %s1647_s5 = inlined_call_operand.hbm [shape: f32[64,128], index: 5, kind: output, shape index: {}]  }
   0x1   :  { %1660 = sst [smem:[#allocation17_spill]] %s1642_s0 }
   0x2   :  { %1661 = sst [smem:[#allocation18_spill]] %s1643_s1 }
   0x3   :  { %1662 = sst [smem:[#allocation19_spill]] %s1644_s2 }
   0x4   :  { %1663 = sst [smem:[#allocation20_spill]] %s1645_s3 }
   0x5   :  { %1664 = sst [smem:[#allocation21_spill]] %s1646_s4 }
   0x6   :  { %1665 = sst [smem:[#allocation22_spill]] %s1647_s5 }
   0x7   :  { %10 = vsyncpa [#allocation3], 0 }
   0x8   :  { %11 = vsyncpa [#allocation6], 0 }
   0x9   :  { %13 = vsyncpa [#allocation6 + $0x1], 0 }
   0xa   :  { %14 = vsyncpa [#allocation4], 0 }
   0xb   :  { %16 = vsyncpa [#allocation4 + $0x1], 0  ;;  %s1325_s18 = smov 0   ;;  %s1327_s19 = smov 0  }
   0xc   :  { %s1329_s20 = smov 0   ;;  %s1331_s21 = smov 0  }
   0xd   :  { %s1333_s22 = smov 0   ;;  %s1335_s23 = smov 0  }
   0xe   :  { %s1337_s24 = smov 0   ;;  %s1339_s25 = smov 0  }
   0xf   :  { %s1341_s26 = smov 0   ;;  %s1343_s27 = smov 0  }
  0x10   :  { %s1345_s28 = smov 0  }
  0x11 LB: > { %1666 = sst [smem:[#allocation11_spill]] %s1244_s18  ;;  %s853_s29 = sadd.s32 4294967295, %s1284_s28   ;;  %s1284_s28 = sphi %s1345_s28, %s22_s28   ;;  %s1280_s27 = sphi %s1343_s27, %s1699_s27   ;;  %s1276_s26 = sphi %s1341_s26, %s1707_s26   ;;  %s1272_s25 = sphi %s1339_s25, %s1697_s25   ;;  %s1268_s24 = sphi %s1337_s24, %s1706_s24   ;;  %s1264_s23 = sphi %s1335_s23, %s1705_s23   ;;  %s1260_s22 = sphi %s1333_s22, %s1704_s22   ;;  %s1256_s21 = sphi %s1331_s21, %s1703_s21   ;;  %s1252_s20 = sphi %s1329_s20, %s1702_s20   ;;  %s1248_s19 = sphi %s1327_s19, %s1701_s19   ;;  %s1244_s18 = sphi %s1325_s18, %s1700_s18  }
  0x12   : > { %1667 = sst [smem:[#allocation12_spill]] %s1280_s27  ;;  %s854_s30 = sadd.s32 4294967294, %s1284_s28  }
  0x13   : > { %p77_p0 = scmp.ne.s32.totalorder %s1260_s22, %s1256_s21  ;;  %p1381_p1 = scmp.eq.s32.totalorder %s853_s29, 0 }
  0x14   : > { %p180_p2 = scmp.ne.s32.totalorder %s1252_s20, %s1248_s19  ;;  %p181_p4 = scmp.eq.s32.totalorder %s853_s29, 5 }
  0x15   : > { %p1390_p3 = por %p1381_p1, %p77_p0  ;;  %p186_p5 = scmp.ne.s32.totalorder %s1248_s19, %s1244_s18 }
  0x16   : > { %p187_p6 = scmp.eq.s32.totalorder %s854_s30, 5  ;;  %p1396_p7 = por %p181_p4, %p180_p2 }
  0x17   : > { %p855_p8 = scmp.ge.s32.totalorder %s1284_s28, 1  ;;  %p194_p10 = scmp.lt.s32.totalorder %s1284_s28, 7 }
  0x18   : > { %s1670_s9 = scalar_select %p1396_p7, 1, 0 }
  0x19   : > { %p1401_p9 = por %p187_p6, %p186_p5  ;;  %p1406_p11 = pnand %p855_p8, %p194_p10 }
  0x1a   : > { %1671 = sst [smem:[#allocation13_spill]] %s1670_s9  ;;  %s1286_s12 = smov [#allocation2]  }
  0x1b   : > { %s1672_s10 = scalar_select %p1401_p9, 1, 0 }
  0x1c   : > { %s206_s13 = sshll.u32 %s1286_s12, 4  ;;  %p965_p12 = pneg %p1406_p11  ;;  %s207_s13 = int_to_ptr.vmem [resolvable:$true] %s206_s13 }
  0x1d   : > { %1673 = sst [smem:[#allocation14_spill]] %s1672_s10  ;;  %s1117_s14 = scalar_lea.vmem %s207_s13, 512 }
  0x1e   : > { %p966_p13 = pnand %p965_p12, %p1381_p1  ;;  %p1118_p2 = scmp.ne.s32.totalorder %s207_s13, %s1117_s14 }
  0x1f   : > { %p1125_p6 = scmp.lt.s32.totalorder %s207_s13, %s207_s13  ;;  %p1126_p9 = scmp.lt.s32.totalorder %s1117_s14, %s1117_s14 }
  0x20   : > { %p1108_p0 = pneg %p966_p13 }
  0x21   : > { %p1127_p7 = por %p1126_p9, %p1125_p6 }
  0x22   : > { %p1120_p4 = pnand %p1118_p2, %p1108_p0 }
  0x24   : > { %p1121_p5 = pneg %p1120_p4 }
  0x26   : > { %p1128_p8 = pnand %p1127_p7, %p1121_p5 }
  0x28   : > { %1131 = shalt.err (!%p1128_p8)
}
  0x29   : > { %s1649_s15 = smov 64   ;;  %s1650_s16 = smov 4  }
  0x2a   : > { %s1675_s0 = sld [smem:[#allocation17_spill]]  ;;  %s31_s29 = sadd.s32 1, %s1276_s26 }
  0x2b   : > { %p32_p7 = scmp.ge.s32.totalorder %s31_s29, 3  ;;  %s34_s30 = sadd.s32 1, %s1280_s27 }
  0x2c   : > { %s64_s12 = sadd.s32 1, %s1264_s23  ;;  %p71_p9 = scmp.ne.s32.totalorder %s1264_s23, %s1260_s22 }
  0x2d   : > { %s1709_s29 = smov (%p32_p7, %s31_s29), 0  ;;  %s1711_s30 = smov (!%p32_p7, %s34_s30), %s1280_s27 }
  0x2e   : > { %1676 = sst [smem:[#allocation15_spill]] %s1709_s29  ;;  %s59_s14 = ssub.s32 %s1276_s26, %s1709_s29 }
  0x2f   : > { %p72_p10 = scmp.eq.s32.totalorder %s1284_s28, 0  ;;  %p36_p12 = scmp.ge.s32.totalorder %s1711_s30, 2 }
  0x30   : > { %968 = dma.hbm_to_vmem [thread:$0]  (!%p966_p13), %s1675_s0, 512, %s207_s13, [#allocation3], %s1649_s15, %s1649_s15, %s1650_s16  }
  0x31   : > { %p978_p0 = scmp.lt.s32.totalorder %s1284_s28, 6  ;;  %p1432_p13 = por %p72_p10, %p71_p9 }
  0x32   : > { %s220_s17 = sand.u32 1, %s1264_s23   ;;  %s1713_s30 = smov (%p36_p12, %s1711_s30), 0 }
  0x33   : > { %1678 = sst [smem:[#allocation16_spill]] %s1713_s30  ;;  %s858_s21 = sshll.u32 %s220_s17, 4 }
  0x34   : > { %s60_s15 = ssub.s32 %s1280_s27, %s1713_s30  ;;  %s859_s7 = sshll.u32 %s1280_s27, 2 }
  0x35   : > { %s61_s16 = sor.u32 %s60_s15, %s59_s14  ;;  %p168_p2 = scmp.eq.s32.totalorder %s60_s15, 0 }
  0x36   : > { %p62_p4 = scmp.eq.s32.totalorder %s61_s16, 0  ;;  %s1679_s0 = sadd.s32 1, %s1252_s20 }
  0x37   : > { %s1445_s29 = scalar_select %p168_p2, %s1252_s20, %s1679_s0  }
  0x38   : > { %s1448_s10 = scalar_select %p62_p4, %s1264_s23, %s64_s12  }
  0x39   : > { %s860_s18 = sshll.u32 %s1276_s26, 3  ;;  %s224_s5 = scalar_lea.vmem [#allocation5], %s858_s21 }
  0x3a   : > { %s233_s9 = sshll.u32 %s224_s5, 4  ;;  %s230_s4 = sadd.s32 %s860_s18, %s859_s7  ;;  %s234_s9 = int_to_ptr.vmem [resolvable:$true] %s233_s9 }
  0x3b   : > { %s861_s2 = sshll.u32 %s230_s4, 6  ;;  %p1455_p5 = pnand %p978_p0, %p1432_p13 }
  0x3c   : > { %s1681_s1 = sld [smem:[#allocation18_spill]]  ;;  %s221_s14 = scalar_lea.sflag [#allocation6], %s220_s17 }
  0x3d   : > { %p1134_p6 = pneg %p1455_p5  ;;  %s1145_s12 = scalar_lea.vmem %s234_s9, 256 }
  0x3e   : > { %p1146_p8 = scmp.ne.s32.totalorder %s234_s9, %s1145_s12  ;;  %s1289_s5 = smov [#allocation5]  }
  0x3f   : > { %s1150_s4 = sshll.u32 %s1289_s5, 4  ;;  %s1151_s4 = int_to_ptr.vmem [resolvable:$false] %s1150_s4 }
  0x40   : > { %p1148_p7 = pnand %p1146_p8, %p1134_p6  ;;  %s1152_s18 = scalar_lea.vmem %s1151_s4, 512 }
  0x41   : > { %p1153_p10 = scmp.lt.s32.totalorder %s234_s9, %s1151_s4  ;;  %p1154_p12 = scmp.lt.s32.totalorder %s1152_s18, %s1145_s12 }
  0x42   : > { %s232_s0 = scalar_lea.hbm %s1681_s1, %s861_s2  ;;  %p1149_p9 = pneg %p1148_p7 }
  0x43   : > { %p1155_p0 = por %p1154_p12, %p1153_p10 }
  0x45   : > { %p1156_p13 = pnand %p1155_p0, %p1149_p9 }
  0x47   : > { %1159 = shalt.err (!%p1156_p13)
}
  0x48   : > { %s1682_s7 = smov 4   ;;  %s1683_s2 = smov 64  }
  0x49   : > { %972 = dma.hbm_to_vmem [thread:$0]  (!%p1455_p5), %s232_s0, 256, %s234_s9, %s221_s14, %s1683_s2, %s1683_s2, %s1682_s7  }
  0x4a   : > { %272 = sbr.rel (%p1406_p11) target bundleno = 619 (0x26b), region = 40 }
  0x4f   : > { %1231 = dma.done.wait (%p1381_p1), [#allocation3], 512  }
  0x50   : > { %1233 = vsyncadd (%p1381_p1), [#allocation3], 4294966784  ;;  %s278_s13 = sand.u32 1, %s1260_s22  }
  0x51   : > { %s1476_s17 = sshll.u32 %s278_s13, 4  ;;  %s279_s3 = scalar_lea.sflag [#allocation6], %s278_s13 }
  0x52   : > { %1235 = dma.done.wait (%p1390_p3), %s279_s3, 256  }
  0x53   : > { %1237 = vsyncadd (%p1390_p3), %s279_s3, 4294967040  ;;  %s1657_s6 = sand.u32 1, %s1248_s19   ;;  %p327_p1 = scmp.lt.s32.totalorder %s1268_s24, 2 }
  0x54   : > { %s865_s9 = sshll.u32 %s1657_s6, 5  ;;  %s868_s11 = sshll.u32 %s1272_s25, 2 }
  0x55   : > { %p338_p11 = scmp.lt.s32.totalorder %s868_s11, 7  ;;  %s1684_s14 = sld [smem:[#allocation20_spill]] }
  0x56   : > { %s1489_s15 = scalar_select %p327_p1, %s1268_s24, 2 }
  0x57   : > { %s1715_s11 = smov (!%p338_p11, %s868_s11), 7  ;;  %s1685_s18 = sld [smem:[#allocation19_spill]] }
  0x58   : > { %s892_s16 = sshll.u32 %s1489_s15, 6  ;;  %s869_s2 = sshll.u32 %s1489_s15, 3 }
  0x59   : > { %s341_s13 = sadd.s32 %s869_s2, %s1715_s11  ;;  %s1686_s1 = sld [smem:[#allocation21_spill]] }
  0x5a   : > { %s870_s3 = sshll.u32 %s341_s13, 3  ;;  %s1505_s27 = scalar_lea.vmem [#allocation7], %s865_s9 }
  0x5b   : > { %s334_s12 = scalar_lea.vmem %s1684_s14, %s1489_s15  ;;  %p871_p3 = scmp.ne.s32.totalorder %s1268_s24, 0 }
  0x5d   : > { %s1499_s7 = scalar_lea.vmem %s1685_s18, %s892_s16  ;;  %350 = sbr.rel (%p871_p3) target bundleno = 101 (0x65), region = 52 }
  0x5f   : > { %s343_s30 = scalar_lea.vmem %s1686_s1, %s870_s3 }
  0x62   : > { %v1290_v0 = vmov 0.0  }
  0x63   : > { %351 = vst [vmem:[%s1505_s27] sm:$0xff] %v1290_v0  ;;  %352 = vst [vmem:[%s1505_s27 + $0x8] sm:$0xff] %v1290_v0 }
  0x64   : > { %353 = vst [vmem:[%s1505_s27 + $0x10] sm:$0xff] %v1290_v0  ;;  %354 = vst [vmem:[%s1505_s27 + $0x18] sm:$0xff] %v1290_v0 }
  0x65 PF: > { %v518_v1 = vld [vmem:[%s343_s30 + $0x10] sm:$0xff]  ;;  %v516_v2 = vld [vmem:[%s343_s30] sm:$0xff]  ;;  %v1291_v3 = vmov 0   ;;  %v519_v4 = vld [vmem:[%s343_s30 + $0x18] sm:$0xff]  ;;  %s1687_s1 = scalar_lea.vmem [#allocation5], %s1476_s17  ;;  %vm579_vm3 = vcmask 523264  }
  0x66   : > { %1077 = vset.pattern.permute.xlu1 %v1291_v3  ;;  %1076 = vset.pattern.permute.xlu0 %v1291_v3  ;;  %v517_v5 = vld [vmem:[%s343_s30 + $0x8] sm:$0xff]  ;;  %v1078_v6 = vld [vmem:[%s1499_s7 + $0x38] sm:$0xff]   ;;  %v1079_v7 = vld [vmem:[%s1499_s7 + $0x30] sm:$0xff]   ;;  %s1688_s24 = smov %s1687_s1  ;;  %s893_s17 = sshll.u32 %s1272_s25, 9 }
  0x67   : > { %533 = vperm.xlu1 %1077, %v518_v1   ;;  %523 = vperm.xlu0 %1076, %v516_v2   ;;  %v1080_v8 = vld [vmem:[%s1499_s7 + $0x28] sm:$0xff]   ;;  %v1081_v9 = vld [vmem:[%s1499_s7 + $0x20] sm:$0xff]   ;;  %v1082_v11 = vld [vmem:[%s1499_s7 + $0x18] sm:$0xff]   ;;  %s1690_s9 = sld [smem:[#allocation13_spill]]  ;;  %s715_s11 = sshll.u32 %s1505_s27, 4  ;;  %s1576_s11 = int_to_ptr.vmem [resolvable:$true] %s715_s11 }
  0x68   : > { %921 = vmatprep.subr.bf16.mxu0 %v1078_v6  ;;  %v1086_v10 = vld [vmem:[#allocation2] sm:$0xff]   ;;  %v1083_v12 = vld [vmem:[%s1499_s7 + $0x10] sm:$0xff]   ;;  %v1084_v13 = vld [vmem:[%s1499_s7 + $0x8] sm:$0xff]   ;;  %s1691_s8 = sld [smem:[#allocation22_spill]]  ;;  %s1692_s25 = sand.u32 1, %s1248_s19  }
  0x69   : > { %922 = vmatpush3.bf16.msra.mxu0 %v1078_v6  ;;  %937 = vmatprep.mubr.bf16.mxu0 %v1086_v10  ;;  %v1085_v14 = vld [vmem:[%s1499_s7] sm:$0xff]   ;;  %v1087_v15 = vld [vmem:[#allocation2 + $0x8] sm:$0xff]   ;;  %v1088_v16 = vld [vmem:[#allocation2 + $0x10] sm:$0xff]   ;;  %s1582_s14 = scalar_lea.sflag [#allocation4], %s1692_s25  ;;  %s1292_s5 = smov [#allocation7]  }
  0x6a   : > { %923 = vmatprep.subr.bf16.mxu0 %v1079_v7  ;;  %v1089_v17 = vld [vmem:[#allocation2 + $0x18] sm:$0xff]   ;;  %v1522_v18 = vld [vmem:[%s1687_s1] sm:$0xff]   ;;  %v1526_v19 = vld [vmem:[%s1688_s24 + $0x8] sm:$0xff]   ;;  %s1164_s4 = sshll.u32 %s1292_s5, 4  ;;  %s1165_s4 = int_to_ptr.vmem [resolvable:$false] %s1164_s4 }
  0x6b   : > { %538 = vperm.xlu1 %1077, %v519_v4   ;;  %528 = vperm.xlu0 %1076, %v517_v5   ;;  %v884_v20 = vld [vmem:[%s334_s12] ss:$0 sm:$0xff]  ;;  %v896_v21 = vunpack.c.l.bf16 %v1522_v18  ;;  %v900_v24 = vunpack.c.l.bf16 %v1526_v19  ;;  %v897_v27 = vunpack.c.h.bf16 %v1522_v18  ;;  %v901_v32 = vunpack.c.h.bf16 %v1526_v19  ;;  %s1160_s12 = scalar_lea.vmem %s1576_s11, 512  ;;  %s1166_s18 = scalar_lea.vmem %s1165_s4, 1024 }
  0x6c   : > { %p1161_p2 = scmp.ne.s32.totalorder %s1576_s11, %s1160_s12  ;;  %p1167_p8 = scmp.lt.s32.totalorder %s1576_s11, %s1165_s4 }
  0x6d   : > { %924 = vmatpush3.bf16.msra.mxu0 %v1079_v7  ;;  %vm571_vm0 = vcmp.gt.f32.partialorder %v896_v21, 0.0  ;;  %vm573_vm4 = vcmp.gt.f32.partialorder %v900_v24, 0.0  ;;  %vm572_vm5 = vcmp.gt.f32.partialorder %v897_v27, 0.0  ;;  %vm574_vm8 = vcmp.gt.f32.partialorder %v901_v32, 0.0  ;;  %p1693_p4 = scmp.ne.s32.totalorder %s1690_s9, 0  ;;  %p1168_p7 = scmp.lt.s32.totalorder %s1166_s18, %s1160_s12 }
  0x6e   : > { %925 = vmatprep.subr.bf16.mxu0 %v1080_v8  ;;  %s1574_s0 = scalar_lea.hbm %s1691_s8, %s893_s17 }
  0x6f   : > { %p1162_p5 = pnand %p1161_p2, %p1693_p4  ;;  %p1169_p9 = por %p1168_p7, %p1167_p8 }
  0x71   : > { %926 = vmatpush3.bf16.msra.mxu0 %v1080_v8  ;;  %p1163_p6 = pneg %p1162_p5 }
  0x72   : > { %927 = vmatprep.subr.bf16.mxu0 %v1081_v9 }
  0x73   : > { %p1170_p10 = pnand %p1169_p9, %p1163_p6 }
  0x75   : > { %928 = vmatpush3.bf16.msra.mxu0 %v1081_v9 }
  0x76   : > { %929 = vmatprep.subr.bf16.mxu0 %v1082_v11 }
  0x79   : > { %930 = vmatpush3.bf16.msra.mxu0 %v1082_v11 }
  0x7a   : > { %931 = vmatprep.subr.bf16.mxu0 %v1083_v12 }
  0x7d   : > { %932 = vmatpush3.bf16.msra.mxu0 %v1083_v12 }
  0x7e   : > { %933 = vmatprep.subr.bf16.mxu0 %v1084_v13 }
  0x81   : > { %934 = vmatpush3.bf16.msra.mxu0 %v1084_v13 }
  0x82   : > { %935 = vmatprep.subr.bf16.mxu0 %v1085_v14 }
  0x85   : > { %936 = vmatpush3.bf16.msra.mxu0 %v1085_v14 }
  0x88   : > { %938 = vmatmul.mubr.bf16.vlgmr.msra.gmra.mxu0 %v1087_v15 }
  0x89   : > { %941 = vmatprep.mubr.bf16.mxu0 %v1088_v16 }
  0x90   : > { %942 = vmatmul.mubr.bf16.gmra.mxu0 %v1089_v17 }
  0xe2   : > { %v534_v22 = vpop.permute.xlu1 %533  ;;  %v524_v23 = vpop.permute.xlu0 %523 }
  0xe3   : > { %v549_v25 = vadd.f32 %v884_v20, %v534_v22  ;;  %v547_v26 = vadd.f32 %v884_v20, %v524_v23 }
  0xe5   : > { %v557_v28 = vmul.f32 0.2, %v549_v25  ;;  %v555_v29 = vmul.f32 0.2, %v547_v26  ;;  %vm551_vm1 = vcmp.ge.f32.partialorder %v547_v26, 0.0  ;;  %vm553_vm2 = vcmp.ge.f32.partialorder %v549_v25, 0.0 }
  0xe6   : > { %v539_v30 = vpop.permute.xlu1 %538  ;;  %v529_v31 = vpop.permute.xlu0 %528 }
  0xe7   : > { %v550_v33 = vadd.f32 %v884_v20, %v539_v30  ;;  %v548_v34 = vadd.f32 %v884_v20, %v529_v31  ;;  %v559_v35 = vsel %vm551_vm1, %v547_v26, %v555_v29  ;;  %v561_v36 = vsel %vm553_vm2, %v549_v25, %v557_v28  ;;  %v683_v29 = vld [vmem:[%s1505_s27 + $0x10] sm:$0xff] }
  0xe8   : > { %v575_v37 = vsel %vm571_vm0, %v559_v35, -1e+30  ;;  %v577_v41 = vsel %vm573_vm4, %v561_v36, -1e+30 }
  0xe9   : > { %v558_v38 = vmul.f32 0.2, %v550_v33  ;;  %v556_v39 = vmul.f32 0.2, %v548_v34  ;;  %v580_v40 = vsel %vm579_vm3, %v575_v37, -inf  ;;  %vm552_vm6 = vcmp.ge.f32.partialorder %v548_v34, 0.0 }
  0xea   : > { %581 = vmax.xlane.f32.xlu0 %v580_v40  ;;  %vm554_vm7 = vcmp.ge.f32.partialorder %v550_v33, 0.0  ;;  %v586_v45 = vsel %vm579_vm3, %v577_v41, -inf }
  0xeb   : > { %v560_v42 = vsel %vm552_vm6, %v548_v34, %v556_v39  ;;  %v562_v43 = vsel %vm554_vm7, %v550_v33, %v558_v38  ;;  %v681_v33 = vld [vmem:[%s1505_s27] sm:$0xff]  ;;  %v684_v38 = vld [vmem:[%s1505_s27 + $0x18] sm:$0xff] }
  0xec   : > { %v576_v44 = vsel %vm572_vm5, %v560_v42, -1e+30  ;;  %v578_v47 = vsel %vm574_vm8, %v562_v43, -1e+30  ;;  %v682_v43 = vld [vmem:[%s1505_s27 + $0x8] sm:$0xff] }
  0xed   : > { %v583_v46 = vsel %vm579_vm3, %v576_v44, -inf  ;;  %v589_v48 = vsel %vm579_vm3, %v578_v47, -inf }
  0xee   : > { %587 = vmax.xlane.f32.xlu0 %v586_v45  ;;  %584 = vmax.xlane.f32.xlu1 %v583_v46 }
  0xf2   : > { %590 = vmax.xlane.f32.xlu0 %v589_v48 }
 0x148   : > { %v939_v49 = vpop.f32.mrf.mxu0 }
 0x14a   : > { %v485_v50 = vpop.f32.mrf.mxu0 }
 0x14c   : > { %v940_v51 = vpop.f32.mrf.mxu0 }
 0x14d   : > { %v623_v59 = vpack.c.bf16 %v940_v51, %v939_v49 }
 0x14e   : > { %v488_v52 = vpop.f32.mrf.mxu0 }
 0x14f   : > { %v622_v60 = vpack.c.bf16 %v488_v52, %v485_v50 }
 0x150   : > { %v943_v53 = vpop.f32.mrf.mxu0 }
 0x152   : > { %v501_v54 = vpop.f32.mrf.mxu0 }
 0x154   : > { %v944_v55 = vpop.f32.mrf.mxu0 }
 0x155   : > { %v625_v56 = vpack.c.bf16 %v944_v55, %v943_v53 }
 0x156   : > { %v504_v57 = vpop.f32.mrf.mxu0 }
 0x157   : > { %945 = vmatprep.subr.bf16.mxu1 %v625_v56  ;;  %v624_v58 = vpack.c.bf16 %v504_v57, %v501_v54 }
 0x158   : > { %946 = vmatpush3.bf16.msra.mxu1 %v625_v56 }
 0x159   : > { %947 = vmatprep.subr.bf16.mxu1 %v624_v58 }
 0x15c   : > { %948 = vmatpush3.bf16.msra.mxu1 %v624_v58 }
 0x15d   : > { %949 = vmatprep.subr.bf16.mxu1 %v623_v59 }
 0x160   : > { %950 = vmatpush3.bf16.msra.mxu1 %v623_v59 }
 0x161   : > { %951 = vmatprep.subr.bf16.mxu1 %v622_v60 }
 0x164   : > { %952 = vmatpush3.bf16.msra.mxu1 %v622_v60 }
 0x173   : > { %v582_v61 = vpop.xlane.xlu0 %581 }
 0x174   : > { %v592_v62 = vsub.f32 %v575_v37, %v582_v61 }
 0x176   : > { %v596_v63 = vmul.f32 1.442695, %v592_v62 }
 0x177   : > { %v585_v0 = vpop.xlane.xlu1 %584  ;;  %v588_v1 = vpop.xlane.xlu0 %587 }
 0x178   : > { %1090 = vpow2.f32 %v596_v63  ;;  %v593_v2 = vsub.f32 %v576_v44, %v585_v0  ;;  %v594_v3 = vsub.f32 %v577_v41, %v588_v1 }
 0x17a   : > { %v598_v4 = vmul.f32 1.442695, %v593_v2  ;;  %v600_v5 = vmul.f32 1.442695, %v594_v3 }
 0x17b   : > { %v591_v6 = vpop.xlane.xlu0 %590 }
 0x17c   : > { %1092 = vpow2.f32 %v598_v4  ;;  %v595_v7 = vsub.f32 %v578_v47, %v591_v6 }
 0x17d   : > { %1094 = vpow2.f32 %v600_v5 }
 0x17e   : > { %v602_v8 = vmul.f32 1.442695, %v595_v7 }
 0x180   : > { %1096 = vpow2.f32 %v602_v8 }
 0x185   : > { %v1091_v9 = vpop.eup %1090 }
 0x186   : > { %v604_v10 = vmul.f32 %v1091_v9, %v896_v21 }
 0x188   : > { %v608_v11 = vsel %vm579_vm3, %v604_v10, 0.0 }
 0x189   : > { %v1093_v12 = vpop.eup %1092  ;;  %609 = vadd.xlane.f32.xlu1 %v608_v11 }
 0x18a   : > { %v1095_v13 = vpop.eup %1094  ;;  %v605_v14 = vmul.f32 %v1093_v12, %v897_v27 }
 0x18b   : > { %v606_v15 = vmul.f32 %v1095_v13, %v900_v24 }
 0x18c   : > { %v611_v16 = vsel %vm579_vm3, %v605_v14, 0.0  ;;  %v620_v17 = vpack.c.bf16 %v605_v14, %v604_v10 }
 0x18d   : > { %v1097_v20 = vpop.eup %1096  ;;  %612 = vadd.xlane.f32.xlu0 %v611_v16  ;;  %v614_v22 = vsel %vm579_vm3, %v606_v15, 0.0 }
 0x18e   : > { %615 = vadd.xlane.f32.xlu1 %v614_v22  ;;  %953 = vmatprep.mubr.msk.bf16.mxu1 %vm579_vm3, %v620_v17  ;;  %v607_v21 = vmul.f32 %v1097_v20, %v901_v32 }
 0x190   : > { %v617_v18 = vsel %vm579_vm3, %v607_v21, 0.0  ;;  %v621_v23 = vpack.c.bf16 %v607_v21, %v606_v15 }
 0x191   : > { %618 = vadd.xlane.f32.xlu0 %v617_v18 }
 0x192   : > { %954 = vmatmul.mubr.msk.bf16.vlgmr.msra.gmra.mxu1 %vm579_vm3, %v621_v23 }
 0x212   : > { %v610_v24 = vpop.xlane.xlu1 %609 }
 0x216   : > { %v613_v25 = vpop.xlane.xlu0 %612 }
 0x217   : > { %v616_v26 = vpop.xlane.xlu1 %615 }
 0x218   : > { %1098 = vrcp.f32 %v616_v26 }
 0x219   : > { %1100 = vrcp.f32 %v610_v24 }
 0x21a   : > { %v619_v27 = vpop.xlane.xlu0 %618 }
 0x21b   : > { %1102 = vrcp.f32 %v619_v27 }
 0x21c   : > { %1104 = vrcp.f32 %v613_v25 }
 0x225   : > { %v1099_v19 = vpop.eup %1098 }
 0x226   : > { %v1101_v31 = vpop.eup %1100 }
 0x228   : > { %v1103_v36 = vpop.eup %1102 }
 0x229   : > { %v1105_v41 = vpop.eup %1104 }
 0x252   : > { %v955_v28 = vpop.f32.mrf.mxu1 }
 0x253   : > { %v691_v30 = vmul.f32 %v1099_v19, %v955_v28 }
 0x254   : > { %v666_v32 = vpop.f32.mrf.mxu1 }
 0x255   : > { %v695_v34 = vadd.f32 %v691_v30, %v683_v29  ;;  %v689_v35 = vmul.f32 %v1101_v31, %v666_v32 }
 0x256   : > { %v956_v37 = vpop.f32.mrf.mxu1 }
 0x257   : > { %699 = vst [vmem:[%s1505_s27 + $0x10] sm:$0xff] %v695_v34  ;;  %v693_v39 = vadd.f32 %v689_v35, %v681_v33  ;;  %v692_v40 = vmul.f32 %v1103_v36, %v956_v37 }
 0x258   : > { %v669_v42 = vpop.f32.mrf.mxu1 }
 0x259   : > { %697 = vst [vmem:[%s1505_s27] sm:$0xff] %v693_v39  ;;  %v696_v44 = vadd.f32 %v692_v40, %v684_v38  ;;  %v690_v45 = vmul.f32 %v1105_v41, %v669_v42 }
 0x25b   : > { %700 = vst [vmem:[%s1505_s27 + $0x18] sm:$0xff] %v696_v44  ;;  %v694_v46 = vadd.f32 %v690_v45, %v682_v43 }
 0x25d   : > { %698 = vst [vmem:[%s1505_s27 + $0x8] sm:$0xff] %v694_v46 }
 0x25e   : > { %1173 = shalt.err (!%p1170_p10)
}
 0x25f   : > { %s1174_s27 = scalar_lea.hbm %s1574_s0, 512  ;;  %s1178_s13 = scalar_lea.hbm %s1691_s8, 1024 }
 0x260   : > { %p1175_p12 = scmp.ne.s32.totalorder %s1574_s0, %s1174_s27  ;;  %p1179_p1 = scmp.lt.s32.totalorder %s1574_s0, %s1691_s8 }
 0x261   : > { %p1180_p11 = scmp.lt.s32.totalorder %s1178_s13, %s1174_s27 }
 0x262   : > { %p1176_p0 = pnand %p1175_p12, %p1693_p4 }
 0x263   : > { %p1181_p3 = por %p1180_p11, %p1179_p1 }
 0x264   : > { %p1177_p13 = pneg %p1176_p0 }
 0x266   : > { %p1182_p2 = pnand %p1181_p3, %p1177_p13 }
 0x268   : > { %1185 = shalt.err (!%p1182_p2)
}
 0x269   : > { %s1293_s24 = smov 128   ;;  %s1294_s30 = smov 8  }
 0x26a   : > { %963 = dma.vmem_to_hbm [thread:$0]  (%p1693_p4), %s1576_s11, 512, %s1574_s0, %s1582_s14, %s1293_s24, %s1293_s24, %s1294_s30  }
 0x26b PF: > { %s1694_s21 = sld [smem:[#allocation11_spill]]  ;;  %p980_p5 = scmp.ge.s32.totalorder %s1284_s28, 2 }
 0x26c   : > { %s1695_s6 = sld [smem:[#allocation14_spill]] }
 0x271   : > { %s730_s17 = sand.u32 1, %s1694_s21  }
 0x272   : > { %p1696_p6 = scmp.ne.s32.totalorder %s1695_s6, 0  ;;  %s731_s15 = scalar_lea.sflag [#allocation4], %s730_s17 }
 0x274   : > { %p974_p8 = pnand %p980_p5, %p1696_p6 }
 0x276   : > { %p975_p7 = pneg %p974_p8 }
 0x278   : > { %1239 = dma.done.wait (%p975_p7), %s731_s15, 512  }
 0x279   : > { %1241 = vsyncadd (%p975_p7), %s731_s15, 4294966784  ;;  %s22_s28 = sadd.s32 1, %s1284_s28   ;;  %s1697_s25 = sld [smem:[#allocation12_spill]] }
 0x27a   : > { %p19_p9 = scmp.ge.s32.totalorder %s22_s28, 8   ;;  %s1698_s9 = sld [smem:[#allocation15_spill]] }
 0x27b   : > { %s1699_s27 = sld [smem:[#allocation16_spill]]  ;;  %s1700_s18 = smov %s1248_s19 }
 0x27c   : > { %s1701_s19 = smov %s1252_s20  ;;  %s1702_s20 = smov %s1445_s29 }
 0x27d   : > { %s1703_s21 = smov %s1260_s22  ;;  %s1704_s22 = smov %s1264_s23 }
 0x27e   : > { %s1705_s23 = smov %s1448_s10  ;;  %s1706_s24 = smov %s1276_s26 }
 0x27f   :  { %21 = sbr.rel (!%p19_p9) target bundleno = 17 (0x11), region = 103 }
 0x280   : > { %s1707_s26 = smov %s1698_s9 }
 0x284   :  { %736 = vsyncpa [#allocation3], 1 }
 0x285   :  { %738 = vsyncpa [#allocation3 + $0x1], 1 }
 0x286   :  { %739 = vsyncpa [#allocation6], 1 }
 0x287   :  { %741 = vsyncpa [#allocation6 + $0x1], 1 }
 0x288   :  { %742 = vsyncpa [#allocation4], 1 }
 0x289   :  { %744 = vsyncpa [#allocation4 + $0x1], 1 }

</bundles_post_ra>
